<compile_context>
chip_gen: v6e
topology: v6e:2x2x1
jax: 0.10.0
libtpu: 0.0.40
codegen_flags: <defaults>
</compile_context>

<pallas_src>
import functools

import jax
import jax.numpy as jnp
from jax.experimental import pallas as pl
from jax.experimental.pallas import tpu as pltpu


def _attention_kernel(x_ref, wq_ref, wk_ref, wv_ref, wo_ref, bo_ref, o_ref,
                      *, block_b, seq_len):
    heads, _, dim_head = wq_ref.shape
    rows, dim = o_ref.shape                      # rows == block_b * seq_len

    x = x_ref[...]                               # (rows, DIM) bf16

    proj = jnp.zeros((rows, dim), jnp.float32)   # f32 accumulator for the out-proj
    for h in range(heads):                       # static unroll; tiny head count
        # Per-head projections; each head's weights are a lane-0-aligned slab,
        # so no masked 16-lane column extracts are needed.
        q = jnp.dot(x, wq_ref[h], preferred_element_type=jnp.float32)   # (rows, dh)
        k = jnp.dot(x, wk_ref[h], preferred_element_type=jnp.float32)
        v = jnp.dot(x, wv_ref[h], preferred_element_type=jnp.float32)

        # Split the row dim back into (block_b, seq_len): leading-dim split only
        # (seq_len == 8 keeps this on sublane-tile boundaries).
        qb = q.reshape(block_b, seq_len, dim_head).astype(jnp.bfloat16)
        kb = k.reshape(block_b, seq_len, dim_head).astype(jnp.bfloat16)
        vb = v.reshape(block_b, seq_len, dim_head).astype(jnp.bfloat16)

        # Scores: batched contraction over dim_head -- no explicit k.T is
        # materialized. Softmax scale is pre-folded into wq on the host.
        dots = jnp.einsum('bqd,bkd->bqk', qb, kb,
                          preferred_element_type=jnp.float32)            # (Bt, N, N)
        dots = dots - jnp.max(dots, axis=-1, keepdims=True)
        p = jnp.exp(dots)
        attn = p * pl.reciprocal(jnp.sum(p, axis=-1, keepdims=True), approx=True)

        o_h = jnp.einsum('bqk,bkd->bqd', attn.astype(jnp.bfloat16), vb,
                         preferred_element_type=jnp.float32)             # (Bt, N, dh)

        # Accumulating each head's contribution through its slice of w_out
        # replaces the head-concat (no cross-lane concatenate).
        o_h = o_h.reshape(rows, dim_head).astype(jnp.bfloat16)
        proj = proj + jnp.dot(o_h, wo_ref[h], preferred_element_type=jnp.float32)

    o_ref[...] = (proj + bo_ref[...]).astype(o_ref.dtype)


def _pick_block_b(batch, seq_len, target_rows=512):
    """Largest divisor of `batch` whose slab has ~target_rows rows."""
    bt = max(1, min(batch, max(1, target_rows // max(seq_len, 1))))
    while batch % bt:
        bt -= 1
    return bt


def rat_attention(x, w_qkv, w_out, b_out, *, heads, dim_head, block_b=None):
    B, N, DIM = x.shape
    inner = heads * dim_head
    assert w_qkv.shape == (DIM, 3 * inner)
    assert w_out.shape == (inner, DIM)
    assert b_out.shape == (1, DIM)
    scale = float(dim_head) ** -0.5

    if block_b is None:
        block_b = _pick_block_b(B, N)
    assert B % block_b == 0
    grid_len = B // block_b
    # TODO(synk): for v7x prefer an even grid_len (2 TensorCores) when B allows it
    # without shrinking the per-step slab below ~256 rows.

    # Host-side weight re-layout: per-head, lane-0-aligned slabs, bf16 operands.
    wq, wk, wv = jnp.split(w_qkv, 3, axis=1)                       # (DIM, inner) each

    def per_head(w):                                               # -> (heads, DIM, dh)
        return w.reshape(DIM, heads, dim_head).transpose(1, 0, 2)

    wq_h = (per_head(wq) * scale).astype(jnp.bfloat16)             # fold softmax scale
    wk_h = per_head(wk).astype(jnp.bfloat16)
    wv_h = per_head(wv).astype(jnp.bfloat16)
    wo_h = w_out.reshape(heads, dim_head, DIM).astype(jnp.bfloat16)
    bo = b_out.astype(jnp.float32)

    # Flatten (B, N, DIM) -> (B*N, DIM) on the host (pure layout plumbing) so each
    # grid step runs one big projection matmul over block_b*N rows.
    x_flat = x.reshape(B * N, DIM).astype(jnp.bfloat16)

    kernel = functools.partial(_attention_kernel, block_b=block_b, seq_len=N)

    out_flat = pl.pallas_call(
        kernel,
        out_shape=jax.ShapeDtypeStruct((B * N, DIM), x.dtype),
        grid_spec=pltpu.PrefetchScalarGridSpec(
            num_scalar_prefetch=0,
            grid=(grid_len,),
            in_specs=[
                pl.BlockSpec((block_b * N, DIM), lambda i: (i, 0)),         # x slab
                pl.BlockSpec((heads, DIM, dim_head), lambda i: (0, 0, 0)),  # w_q (scaled)
                pl.BlockSpec((heads, DIM, dim_head), lambda i: (0, 0, 0)),  # w_k
                pl.BlockSpec((heads, DIM, dim_head), lambda i: (0, 0, 0)),  # w_v
                pl.BlockSpec((heads, dim_head, DIM), lambda i: (0, 0, 0)),  # w_out
                pl.BlockSpec((1, DIM), lambda i: (0, 0)),                   # b_out
            ],
            out_specs=pl.BlockSpec((block_b * N, DIM), lambda i: (i, 0)),
        ),
        compiler_params=pltpu.CompilerParams(
            dimension_semantics=("parallel",),
            vmem_limit_bytes=64 * 1024 * 1024),
    )(x_flat, wq_h, wk_h, wv_h, wo_h, bo)

    return out_flat.reshape(B, N, DIM)


def rat_attention_reference(x, w_qkv, w_out, b_out, *, heads, dim_head):
    """Pure-JAX f32 reference mirroring the PyTorch forward."""
    B, N, DIM = x.shape
    inner = heads * dim_head
    scale = float(dim_head) ** -0.5
    qkv = x @ w_qkv                                          # (B, N, 3*inner)
    q, k, v = jnp.split(qkv, 3, axis=-1)

    def to_heads(t):  # 'b n (h d) -> b h n d'
        return t.reshape(B, N, heads, dim_head).transpose(0, 2, 1, 3)

    q, k, v = map(to_heads, (q, k, v))
    dots = jnp.einsum('bhid,bhjd->bhij', q, k) * scale
    attn = jax.nn.softmax(dots, axis=-1)
    out = jnp.einsum('bhij,bhjd->bhid', attn, v)
    out = out.transpose(0, 2, 1, 3).reshape(B, N, inner)     # 'b h n d -> b n (h d)'
    return out @ w_out + b_out


if __name__ == "__main__":
    # Small shapes consistent with the module's forward.
    B, N, DIM = 2, 8, 32
    HEADS, DIM_HEAD = 4, 16
    INNER = HEADS * DIM_HEAD

    key = jax.random.PRNGKey(0)
    kx, kq, kw, kb = jax.random.split(key, 4)

    x = jax.random.normal(kx, (B, N, DIM), dtype=jnp.float32)
    # Deterministic synthetic parameters (nn.Linear-shaped, transposed for x @ W).
    w_qkv = 0.05 * jax.random.normal(kq, (DIM, 3 * INNER), dtype=jnp.float32)
    w_out = 0.05 * jax.random.normal(kw, (INNER, DIM), dtype=jnp.float32)
    b_out = 0.05 * jax.random.normal(kb, (1, DIM), dtype=jnp.float32)

    out = rat_attention(x, w_qkv, w_out, b_out, heads=HEADS, dim_head=DIM_HEAD)
    out = jax.block_until_ready(out)

    ref = rat_attention_reference(x, w_qkv, w_out, b_out, heads=HEADS, dim_head=DIM_HEAD)
    assert out.shape == (B, N, DIM)
    # bf16 matmul operands + approx reciprocal -> looser tolerance than pure f32.
    assert jnp.allclose(out, ref, atol=2e-2, rtol=2e-2), "mismatch vs reference"

    print("KERNEL_OK")
</pallas_src>

<mosaic_0001>
module attributes {stable_mosaic.version = 11 : i64} {
  func.func @_attention_kernel(%arg0: i32, %arg1: memref<16x32xbf16, #tpu.memory_space<vmem>>, %arg2: memref<4x32x16xbf16, #tpu.memory_space<vmem>>, %arg3: memref<4x32x16xbf16, #tpu.memory_space<vmem>>, %arg4: memref<4x32x16xbf16, #tpu.memory_space<vmem>>, %arg5: memref<4x16x32xbf16, #tpu.memory_space<vmem>>, %arg6: memref<1x32xf32, #tpu.memory_space<vmem>>, %arg7: memref<16x32xf32, #tpu.memory_space<vmem>>) attributes {dimension_semantics = [#tpu.dimension_semantics<parallel>], iteration_bounds = array<i64: 1>, scalar_prefetch = 0 : i64, scratch_operands = 0 : i64, tpu.core_type = #tpu.core_type<tc>, window_params = [{transform_indices = @transform_0, window_bounds = array<i64: 16, 32>}, {pipeline_mode = #tpu.pipeline_mode<synchronous>, transform_indices = @transform_1, window_bounds = array<i64: 4, 32, 16>}, {pipeline_mode = #tpu.pipeline_mode<synchronous>, transform_indices = @transform_2, window_bounds = array<i64: 4, 32, 16>}, {pipeline_mode = #tpu.pipeline_mode<synchronous>, transform_indices = @transform_3, window_bounds = array<i64: 4, 32, 16>}, {pipeline_mode = #tpu.pipeline_mode<synchronous>, transform_indices = @transform_4, window_bounds = array<i64: 4, 16, 32>}, {pipeline_mode = #tpu.pipeline_mode<synchronous>, transform_indices = @transform_5, window_bounds = array<i64: 1, 32>}, {transform_indices = @transform_6, window_bounds = array<i64: 16, 32>}]} {
    %c0 = arith.constant 0 : index
    %c0_0 = arith.constant 0 : index
    %0 = vector.load %arg1[%c0, %c0_0] : memref<16x32xbf16, #tpu.memory_space<vmem>>, vector<16x32xbf16>
    %cst = arith.constant 0.000000e+00 : f32
    %1 = vector.broadcast %cst : f32 to vector<16x32xf32>
    %c0_1 = arith.constant 0 : index
    %c0_2 = arith.constant 0 : index
    %c0_3 = arith.constant 0 : index
    %2 = vector.load %arg2[%c0_1, %c0_2, %c0_3] : memref<4x32x16xbf16, #tpu.memory_space<vmem>>, vector<1x32x16xbf16>
    %3 = vector.shape_cast %2 : vector<1x32x16xbf16> to vector<32x16xbf16>
    %cst_4 = arith.constant dense<0.000000e+00> : vector<16x16xf32>
    %4 = tpu.matmul %0, %3, %cst_4 {dimension_numbers = #tpu.dot_dimension_numbers<[1], [0], [0], [1], [0, 0, 1, 1], [], []>} : vector<16x32xbf16>, vector<32x16xbf16>, vector<16x16xf32> -> vector<16x16xf32>
    %c0_5 = arith.constant 0 : index
    %c0_6 = arith.constant 0 : index
    %c0_7 = arith.constant 0 : index
    %5 = vector.load %arg3[%c0_5, %c0_6, %c0_7] : memref<4x32x16xbf16, #tpu.memory_space<vmem>>, vector<1x32x16xbf16>
    %6 = vector.shape_cast %5 : vector<1x32x16xbf16> to vector<32x16xbf16>
    %cst_8 = arith.constant dense<0.000000e+00> : vector<16x16xf32>
    %7 = tpu.matmul %0, %6, %cst_8 {dimension_numbers = #tpu.dot_dimension_numbers<[1], [0], [0], [1], [0, 0, 1, 1], [], []>} : vector<16x32xbf16>, vector<32x16xbf16>, vector<16x16xf32> -> vector<16x16xf32>
    %c0_9 = arith.constant 0 : index
    %c0_10 = arith.constant 0 : index
    %c0_11 = arith.constant 0 : index
    %8 = vector.load %arg4[%c0_9, %c0_10, %c0_11] : memref<4x32x16xbf16, #tpu.memory_space<vmem>>, vector<1x32x16xbf16>
    %9 = vector.shape_cast %8 : vector<1x32x16xbf16> to vector<32x16xbf16>
    %cst_12 = arith.constant dense<0.000000e+00> : vector<16x16xf32>
    %10 = tpu.matmul %0, %9, %cst_12 {dimension_numbers = #tpu.dot_dimension_numbers<[1], [0], [0], [1], [0, 0, 1, 1], [], []>} : vector<16x32xbf16>, vector<32x16xbf16>, vector<16x16xf32> -> vector<16x16xf32>
    %11 = vector.shape_cast %4 : vector<16x16xf32> to vector<2x8x16xf32>
    %12 = arith.truncf %11 : vector<2x8x16xf32> to vector<2x8x16xbf16>
    %13 = vector.shape_cast %7 : vector<16x16xf32> to vector<2x8x16xf32>
    %14 = arith.truncf %13 : vector<2x8x16xf32> to vector<2x8x16xbf16>
    %15 = vector.shape_cast %10 : vector<16x16xf32> to vector<2x8x16xf32>
    %16 = arith.truncf %15 : vector<2x8x16xf32> to vector<2x8x16xbf16>
    "tpu.trace_start"() <{level = 10 : i32, message = "bqd,bkd->bqk"}> : () -> ()
    %cst_13 = arith.constant dense<0.000000e+00> : vector<2x8x8xf32>
    %17 = tpu.matmul %12, %14, %cst_13 {dimension_numbers = #tpu.dot_dimension_numbers<[2], [2], [1], [1], [0, 0, 0, 1, 1, 1], [0], [0]>} : vector<2x8x16xbf16>, vector<2x8x16xbf16>, vector<2x8x8xf32> -> vector<2x8x8xf32>
    "tpu.trace_stop"() : () -> ()
    %cst_14 = arith.constant dense<0xFF800000> : vector<2x8xf32>
    %18 = vector.multi_reduction <maximumf>, %17, %cst_14 [2] : vector<2x8x8xf32> to vector<2x8xf32>
    %19 = vector.shape_cast %18 : vector<2x8xf32> to vector<2x8x1xf32>
    %20 = vector.broadcast %19 : vector<2x8x1xf32> to vector<2x8x8xf32>
    %21 = arith.subf %17, %20 : vector<2x8x8xf32>
    %22 = math.exp %21 : vector<2x8x8xf32>
    %cst_15 = arith.constant dense<0.000000e+00> : vector<2x8xf32>
    %23 = vector.multi_reduction <add>, %22, %cst_15 [2] : vector<2x8x8xf32> to vector<2x8xf32>
    %24 = vector.shape_cast %23 : vector<2x8xf32> to vector<2x8x1xf32>
    %25 = tpu.reciprocal %24 {approx = true} : vector<2x8x1xf32> -> vector<2x8x1xf32>
    %26 = vector.broadcast %25 : vector<2x8x1xf32> to vector<2x8x8xf32>
    %27 = arith.mulf %22, %26 : vector<2x8x8xf32>
    %28 = arith.truncf %27 : vector<2x8x8xf32> to vector<2x8x8xbf16>
    "tpu.trace_start"() <{level = 10 : i32, message = "bqk,bkd->bqd"}> : () -> ()
    %cst_16 = arith.constant dense<0.000000e+00> : vector<2x8x16xf32>
    %29 = tpu.matmul %28, %16, %cst_16 {dimension_numbers = #tpu.dot_dimension_numbers<[2], [1], [1], [2], [0, 0, 0, 1, 1, 2], [0], [0]>} : vector<2x8x8xbf16>, vector<2x8x16xbf16>, vector<2x8x16xf32> -> vector<2x8x16xf32>
    "tpu.trace_stop"() : () -> ()
    %30 = vector.shape_cast %29 : vector<2x8x16xf32> to vector<16x16xf32>
    %31 = arith.truncf %30 : vector<16x16xf32> to vector<16x16xbf16>
    %c0_17 = arith.constant 0 : index
    %c0_18 = arith.constant 0 : index
    %c0_19 = arith.constant 0 : index
    %32 = vector.load %arg5[%c0_17, %c0_18, %c0_19] : memref<4x16x32xbf16, #tpu.memory_space<vmem>>, vector<1x16x32xbf16>
    %33 = vector.shape_cast %32 : vector<1x16x32xbf16> to vector<16x32xbf16>
    %cst_20 = arith.constant dense<0.000000e+00> : vector<16x32xf32>
    %34 = tpu.matmul %31, %33, %cst_20 {dimension_numbers = #tpu.dot_dimension_numbers<[1], [0], [0], [1], [0, 0, 1, 1], [], []>} : vector<16x16xbf16>, vector<16x32xbf16>, vector<16x32xf32> -> vector<16x32xf32>
    %35 = arith.addf %1, %34 : vector<16x32xf32>
    %c1 = arith.constant 1 : index
    %c0_21 = arith.constant 0 : index
    %c0_22 = arith.constant 0 : index
    %36 = vector.load %arg2[%c1, %c0_21, %c0_22] : memref<4x32x16xbf16, #tpu.memory_space<vmem>>, vector<1x32x16xbf16>
    %37 = vector.shape_cast %36 : vector<1x32x16xbf16> to vector<32x16xbf16>
    %cst_23 = arith.constant dense<0.000000e+00> : vector<16x16xf32>
    %38 = tpu.matmul %0, %37, %cst_23 {dimension_numbers = #tpu.dot_dimension_numbers<[1], [0], [0], [1], [0, 0, 1, 1], [], []>} : vector<16x32xbf16>, vector<32x16xbf16>, vector<16x16xf32> -> vector<16x16xf32>
    %c1_24 = arith.constant 1 : index
    %c0_25 = arith.constant 0 : index
    %c0_26 = arith.constant 0 : index
    %39 = vector.load %arg3[%c1_24, %c0_25, %c0_26] : memref<4x32x16xbf16, #tpu.memory_space<vmem>>, vector<1x32x16xbf16>
    %40 = vector.shape_cast %39 : vector<1x32x16xbf16> to vector<32x16xbf16>
    %cst_27 = arith.constant dense<0.000000e+00> : vector<16x16xf32>
    %41 = tpu.matmul %0, %40, %cst_27 {dimension_numbers = #tpu.dot_dimension_numbers<[1], [0], [0], [1], [0, 0, 1, 1], [], []>} : vector<16x32xbf16>, vector<32x16xbf16>, vector<16x16xf32> -> vector<16x16xf32>
    %c1_28 = arith.constant 1 : index
    %c0_29 = arith.constant 0 : index
    %c0_30 = arith.constant 0 : index
    %42 = vector.load %arg4[%c1_28, %c0_29, %c0_30] : memref<4x32x16xbf16, #tpu.memory_space<vmem>>, vector<1x32x16xbf16>
    %43 = vector.shape_cast %42 : vector<1x32x16xbf16> to vector<32x16xbf16>
    %cst_31 = arith.constant dense<0.000000e+00> : vector<16x16xf32>
    %44 = tpu.matmul %0, %43, %cst_31 {dimension_numbers = #tpu.dot_dimension_numbers<[1], [0], [0], [1], [0, 0, 1, 1], [], []>} : vector<16x32xbf16>, vector<32x16xbf16>, vector<16x16xf32> -> vector<16x16xf32>
    %45 = vector.shape_cast %38 : vector<16x16xf32> to vector<2x8x16xf32>
    %46 = arith.truncf %45 : vector<2x8x16xf32> to vector<2x8x16xbf16>
    %47 = vector.shape_cast %41 : vector<16x16xf32> to vector<2x8x16xf32>
    %48 = arith.truncf %47 : vector<2x8x16xf32> to vector<2x8x16xbf16>
    %49 = vector.shape_cast %44 : vector<16x16xf32> to vector<2x8x16xf32>
    %50 = arith.truncf %49 : vector<2x8x16xf32> to vector<2x8x16xbf16>
    "tpu.trace_start"() <{level = 10 : i32, message = "bqd,bkd->bqk"}> : () -> ()
    %cst_32 = arith.constant dense<0.000000e+00> : vector<2x8x8xf32>
    %51 = tpu.matmul %46, %48, %cst_32 {dimension_numbers = #tpu.dot_dimension_numbers<[2], [2], [1], [1], [0, 0, 0, 1, 1, 1], [0], [0]>} : vector<2x8x16xbf16>, vector<2x8x16xbf16>, vector<2x8x8xf32> -> vector<2x8x8xf32>
    "tpu.trace_stop"() : () -> ()
    %cst_33 = arith.constant dense<0xFF800000> : vector<2x8xf32>
    %52 = vector.multi_reduction <maximumf>, %51, %cst_33 [2] : vector<2x8x8xf32> to vector<2x8xf32>
    %53 = vector.shape_cast %52 : vector<2x8xf32> to vector<2x8x1xf32>
    %54 = vector.broadcast %53 : vector<2x8x1xf32> to vector<2x8x8xf32>
    %55 = arith.subf %51, %54 : vector<2x8x8xf32>
    %56 = math.exp %55 : vector<2x8x8xf32>
    %cst_34 = arith.constant dense<0.000000e+00> : vector<2x8xf32>
    %57 = vector.multi_reduction <add>, %56, %cst_34 [2] : vector<2x8x8xf32> to vector<2x8xf32>
    %58 = vector.shape_cast %57 : vector<2x8xf32> to vector<2x8x1xf32>
    %59 = tpu.reciprocal %58 {approx = true} : vector<2x8x1xf32> -> vector<2x8x1xf32>
    %60 = vector.broadcast %59 : vector<2x8x1xf32> to vector<2x8x8xf32>
    %61 = arith.mulf %56, %60 : vector<2x8x8xf32>
    %62 = arith.truncf %61 : vector<2x8x8xf32> to vector<2x8x8xbf16>
    "tpu.trace_start"() <{level = 10 : i32, message = "bqk,bkd->bqd"}> : () -> ()
    %cst_35 = arith.constant dense<0.000000e+00> : vector<2x8x16xf32>
    %63 = tpu.matmul %62, %50, %cst_35 {dimension_numbers = #tpu.dot_dimension_numbers<[2], [1], [1], [2], [0, 0, 0, 1, 1, 2], [0], [0]>} : vector<2x8x8xbf16>, vector<2x8x16xbf16>, vector<2x8x16xf32> -> vector<2x8x16xf32>
    "tpu.trace_stop"() : () -> ()
    %64 = vector.shape_cast %63 : vector<2x8x16xf32> to vector<16x16xf32>
    %65 = arith.truncf %64 : vector<16x16xf32> to vector<16x16xbf16>
    %c1_36 = arith.constant 1 : index
    %c0_37 = arith.constant 0 : index
    %c0_38 = arith.constant 0 : index
    %66 = vector.load %arg5[%c1_36, %c0_37, %c0_38] : memref<4x16x32xbf16, #tpu.memory_space<vmem>>, vector<1x16x32xbf16>
    %67 = vector.shape_cast %66 : vector<1x16x32xbf16> to vector<16x32xbf16>
    %cst_39 = arith.constant dense<0.000000e+00> : vector<16x32xf32>
    %68 = tpu.matmul %65, %67, %cst_39 {dimension_numbers = #tpu.dot_dimension_numbers<[1], [0], [0], [1], [0, 0, 1, 1], [], []>} : vector<16x16xbf16>, vector<16x32xbf16>, vector<16x32xf32> -> vector<16x32xf32>
    %69 = arith.addf %35, %68 : vector<16x32xf32>
    %c2 = arith.constant 2 : index
    %c0_40 = arith.constant 0 : index
    %c0_41 = arith.constant 0 : index
    %70 = vector.load %arg2[%c2, %c0_40, %c0_41] : memref<4x32x16xbf16, #tpu.memory_space<vmem>>, vector<1x32x16xbf16>
    %71 = vector.shape_cast %70 : vector<1x32x16xbf16> to vector<32x16xbf16>
    %cst_42 = arith.constant dense<0.000000e+00> : vector<16x16xf32>
    %72 = tpu.matmul %0, %71, %cst_42 {dimension_numbers = #tpu.dot_dimension_numbers<[1], [0], [0], [1], [0, 0, 1, 1], [], []>} : vector<16x32xbf16>, vector<32x16xbf16>, vector<16x16xf32> -> vector<16x16xf32>
    %c2_43 = arith.constant 2 : index
    %c0_44 = arith.constant 0 : index
    %c0_45 = arith.constant 0 : index
    %73 = vector.load %arg3[%c2_43, %c0_44, %c0_45] : memref<4x32x16xbf16, #tpu.memory_space<vmem>>, vector<1x32x16xbf16>
    %74 = vector.shape_cast %73 : vector<1x32x16xbf16> to vector<32x16xbf16>
    %cst_46 = arith.constant dense<0.000000e+00> : vector<16x16xf32>
    %75 = tpu.matmul %0, %74, %cst_46 {dimension_numbers = #tpu.dot_dimension_numbers<[1], [0], [0], [1], [0, 0, 1, 1], [], []>} : vector<16x32xbf16>, vector<32x16xbf16>, vector<16x16xf32> -> vector<16x16xf32>
    %c2_47 = arith.constant 2 : index
    %c0_48 = arith.constant 0 : index
    %c0_49 = arith.constant 0 : index
    %76 = vector.load %arg4[%c2_47, %c0_48, %c0_49] : memref<4x32x16xbf16, #tpu.memory_space<vmem>>, vector<1x32x16xbf16>
    %77 = vector.shape_cast %76 : vector<1x32x16xbf16> to vector<32x16xbf16>
    %cst_50 = arith.constant dense<0.000000e+00> : vector<16x16xf32>
    %78 = tpu.matmul %0, %77, %cst_50 {dimension_numbers = #tpu.dot_dimension_numbers<[1], [0], [0], [1], [0, 0, 1, 1], [], []>} : vector<16x32xbf16>, vector<32x16xbf16>, vector<16x16xf32> -> vector<16x16xf32>
    %79 = vector.shape_cast %72 : vector<16x16xf32> to vector<2x8x16xf32>
    %80 = arith.truncf %79 : vector<2x8x16xf32> to vector<2x8x16xbf16>
    %81 = vector.shape_cast %75 : vector<16x16xf32> to vector<2x8x16xf32>
    %82 = arith.truncf %81 : vector<2x8x16xf32> to vector<2x8x16xbf16>
    %83 = vector.shape_cast %78 : vector<16x16xf32> to vector<2x8x16xf32>
    %84 = arith.truncf %83 : vector<2x8x16xf32> to vector<2x8x16xbf16>
    "tpu.trace_start"() <{level = 10 : i32, message = "bqd,bkd->bqk"}> : () -> ()
    %cst_51 = arith.constant dense<0.000000e+00> : vector<2x8x8xf32>
    %85 = tpu.matmul %80, %82, %cst_51 {dimension_numbers = #tpu.dot_dimension_numbers<[2], [2], [1], [1], [0, 0, 0, 1, 1, 1], [0], [0]>} : vector<2x8x16xbf16>, vector<2x8x16xbf16>, vector<2x8x8xf32> -> vector<2x8x8xf32>
    "tpu.trace_stop"() : () -> ()
    %cst_52 = arith.constant dense<0xFF800000> : vector<2x8xf32>
    %86 = vector.multi_reduction <maximumf>, %85, %cst_52 [2] : vector<2x8x8xf32> to vector<2x8xf32>
    %87 = vector.shape_cast %86 : vector<2x8xf32> to vector<2x8x1xf32>
    %88 = vector.broadcast %87 : vector<2x8x1xf32> to vector<2x8x8xf32>
    %89 = arith.subf %85, %88 : vector<2x8x8xf32>
    %90 = math.exp %89 : vector<2x8x8xf32>
    %cst_53 = arith.constant dense<0.000000e+00> : vector<2x8xf32>
    %91 = vector.multi_reduction <add>, %90, %cst_53 [2] : vector<2x8x8xf32> to vector<2x8xf32>
    %92 = vector.shape_cast %91 : vector<2x8xf32> to vector<2x8x1xf32>
    %93 = tpu.reciprocal %92 {approx = true} : vector<2x8x1xf32> -> vector<2x8x1xf32>
    %94 = vector.broadcast %93 : vector<2x8x1xf32> to vector<2x8x8xf32>
    %95 = arith.mulf %90, %94 : vector<2x8x8xf32>
    %96 = arith.truncf %95 : vector<2x8x8xf32> to vector<2x8x8xbf16>
    "tpu.trace_start"() <{level = 10 : i32, message = "bqk,bkd->bqd"}> : () -> ()
    %cst_54 = arith.constant dense<0.000000e+00> : vector<2x8x16xf32>
    %97 = tpu.matmul %96, %84, %cst_54 {dimension_numbers = #tpu.dot_dimension_numbers<[2], [1], [1], [2], [0, 0, 0, 1, 1, 2], [0], [0]>} : vector<2x8x8xbf16>, vector<2x8x16xbf16>, vector<2x8x16xf32> -> vector<2x8x16xf32>
    "tpu.trace_stop"() : () -> ()
    %98 = vector.shape_cast %97 : vector<2x8x16xf32> to vector<16x16xf32>
    %99 = arith.truncf %98 : vector<16x16xf32> to vector<16x16xbf16>
    %c2_55 = arith.constant 2 : index
    %c0_56 = arith.constant 0 : index
    %c0_57 = arith.constant 0 : index
    %100 = vector.load %arg5[%c2_55, %c0_56, %c0_57] : memref<4x16x32xbf16, #tpu.memory_space<vmem>>, vector<1x16x32xbf16>
    %101 = vector.shape_cast %100 : vector<1x16x32xbf16> to vector<16x32xbf16>
    %cst_58 = arith.constant dense<0.000000e+00> : vector<16x32xf32>
    %102 = tpu.matmul %99, %101, %cst_58 {dimension_numbers = #tpu.dot_dimension_numbers<[1], [0], [0], [1], [0, 0, 1, 1], [], []>} : vector<16x16xbf16>, vector<16x32xbf16>, vector<16x32xf32> -> vector<16x32xf32>
    %103 = arith.addf %69, %102 : vector<16x32xf32>
    %c3 = arith.constant 3 : index
    %c0_59 = arith.constant 0 : index
    %c0_60 = arith.constant 0 : index
    %104 = vector.load %arg2[%c3, %c0_59, %c0_60] : memref<4x32x16xbf16, #tpu.memory_space<vmem>>, vector<1x32x16xbf16>
    %105 = vector.shape_cast %104 : vector<1x32x16xbf16> to vector<32x16xbf16>
    %cst_61 = arith.constant dense<0.000000e+00> : vector<16x16xf32>
    %106 = tpu.matmul %0, %105, %cst_61 {dimension_numbers = #tpu.dot_dimension_numbers<[1], [0], [0], [1], [0, 0, 1, 1], [], []>} : vector<16x32xbf16>, vector<32x16xbf16>, vector<16x16xf32> -> vector<16x16xf32>
    %c3_62 = arith.constant 3 : index
    %c0_63 = arith.constant 0 : index
    %c0_64 = arith.constant 0 : index
    %107 = vector.load %arg3[%c3_62, %c0_63, %c0_64] : memref<4x32x16xbf16, #tpu.memory_space<vmem>>, vector<1x32x16xbf16>
    %108 = vector.shape_cast %107 : vector<1x32x16xbf16> to vector<32x16xbf16>
    %cst_65 = arith.constant dense<0.000000e+00> : vector<16x16xf32>
    %109 = tpu.matmul %0, %108, %cst_65 {dimension_numbers = #tpu.dot_dimension_numbers<[1], [0], [0], [1], [0, 0, 1, 1], [], []>} : vector<16x32xbf16>, vector<32x16xbf16>, vector<16x16xf32> -> vector<16x16xf32>
    %c3_66 = arith.constant 3 : index
    %c0_67 = arith.constant 0 : index
    %c0_68 = arith.constant 0 : index
    %110 = vector.load %arg4[%c3_66, %c0_67, %c0_68] : memref<4x32x16xbf16, #tpu.memory_space<vmem>>, vector<1x32x16xbf16>
    %111 = vector.shape_cast %110 : vector<1x32x16xbf16> to vector<32x16xbf16>
    %cst_69 = arith.constant dense<0.000000e+00> : vector<16x16xf32>
    %112 = tpu.matmul %0, %111, %cst_69 {dimension_numbers = #tpu.dot_dimension_numbers<[1], [0], [0], [1], [0, 0, 1, 1], [], []>} : vector<16x32xbf16>, vector<32x16xbf16>, vector<16x16xf32> -> vector<16x16xf32>
    %113 = vector.shape_cast %106 : vector<16x16xf32> to vector<2x8x16xf32>
    %114 = arith.truncf %113 : vector<2x8x16xf32> to vector<2x8x16xbf16>
    %115 = vector.shape_cast %109 : vector<16x16xf32> to vector<2x8x16xf32>
    %116 = arith.truncf %115 : vector<2x8x16xf32> to vector<2x8x16xbf16>
    %117 = vector.shape_cast %112 : vector<16x16xf32> to vector<2x8x16xf32>
    %118 = arith.truncf %117 : vector<2x8x16xf32> to vector<2x8x16xbf16>
    "tpu.trace_start"() <{level = 10 : i32, message = "bqd,bkd->bqk"}> : () -> ()
    %cst_70 = arith.constant dense<0.000000e+00> : vector<2x8x8xf32>
    %119 = tpu.matmul %114, %116, %cst_70 {dimension_numbers = #tpu.dot_dimension_numbers<[2], [2], [1], [1], [0, 0, 0, 1, 1, 1], [0], [0]>} : vector<2x8x16xbf16>, vector<2x8x16xbf16>, vector<2x8x8xf32> -> vector<2x8x8xf32>
    "tpu.trace_stop"() : () -> ()
    %cst_71 = arith.constant dense<0xFF800000> : vector<2x8xf32>
    %120 = vector.multi_reduction <maximumf>, %119, %cst_71 [2] : vector<2x8x8xf32> to vector<2x8xf32>
    %121 = vector.shape_cast %120 : vector<2x8xf32> to vector<2x8x1xf32>
    %122 = vector.broadcast %121 : vector<2x8x1xf32> to vector<2x8x8xf32>
    %123 = arith.subf %119, %122 : vector<2x8x8xf32>
    %124 = math.exp %123 : vector<2x8x8xf32>
    %cst_72 = arith.constant dense<0.000000e+00> : vector<2x8xf32>
    %125 = vector.multi_reduction <add>, %124, %cst_72 [2] : vector<2x8x8xf32> to vector<2x8xf32>
    %126 = vector.shape_cast %125 : vector<2x8xf32> to vector<2x8x1xf32>
    %127 = tpu.reciprocal %126 {approx = true} : vector<2x8x1xf32> -> vector<2x8x1xf32>
    %128 = vector.broadcast %127 : vector<2x8x1xf32> to vector<2x8x8xf32>
    %129 = arith.mulf %124, %128 : vector<2x8x8xf32>
    %130 = arith.truncf %129 : vector<2x8x8xf32> to vector<2x8x8xbf16>
    "tpu.trace_start"() <{level = 10 : i32, message = "bqk,bkd->bqd"}> : () -> ()
    %cst_73 = arith.constant dense<0.000000e+00> : vector<2x8x16xf32>
    %131 = tpu.matmul %130, %118, %cst_73 {dimension_numbers = #tpu.dot_dimension_numbers<[2], [1], [1], [2], [0, 0, 0, 1, 1, 2], [0], [0]>} : vector<2x8x8xbf16>, vector<2x8x16xbf16>, vector<2x8x16xf32> -> vector<2x8x16xf32>
    "tpu.trace_stop"() : () -> ()
    %132 = vector.shape_cast %131 : vector<2x8x16xf32> to vector<16x16xf32>
    %133 = arith.truncf %132 : vector<16x16xf32> to vector<16x16xbf16>
    %c3_74 = arith.constant 3 : index
    %c0_75 = arith.constant 0 : index
    %c0_76 = arith.constant 0 : index
    %134 = vector.load %arg5[%c3_74, %c0_75, %c0_76] : memref<4x16x32xbf16, #tpu.memory_space<vmem>>, vector<1x16x32xbf16>
    %135 = vector.shape_cast %134 : vector<1x16x32xbf16> to vector<16x32xbf16>
    %cst_77 = arith.constant dense<0.000000e+00> : vector<16x32xf32>
    %136 = tpu.matmul %133, %135, %cst_77 {dimension_numbers = #tpu.dot_dimension_numbers<[1], [0], [0], [1], [0, 0, 1, 1], [], []>} : vector<16x16xbf16>, vector<16x32xbf16>, vector<16x32xf32> -> vector<16x32xf32>
    %137 = arith.addf %103, %136 : vector<16x32xf32>
    %c0_78 = arith.constant 0 : index
    %c0_79 = arith.constant 0 : index
    %138 = vector.load %arg6[%c0_78, %c0_79] : memref<1x32xf32, #tpu.memory_space<vmem>>, vector<1x32xf32>
    %139 = vector.broadcast %138 : vector<1x32xf32> to vector<16x32xf32>
    %140 = arith.addf %137, %139 : vector<16x32xf32>
    %c0_80 = arith.constant 0 : index
    %c0_81 = arith.constant 0 : index
    %141 = vector.load %arg7[%c0_80, %c0_81] : memref<16x32xf32, #tpu.memory_space<vmem>>, vector<16x32xf32>
    tpu.vector_store %arg7[%c0_80, %c0_81], %140 {strides = array<i32>} : memref<16x32xf32, #tpu.memory_space<vmem>>, vector<16x32xf32>,
    return
  }
  func.func @transform_0(%arg0: i32) -> (i32, i32) {
    %c0_i32 = arith.constant 0 : i32
    %c0_i32_0 = arith.constant 0 : i32
    return %arg0, %c0_i32 : i32, i32
  }
  func.func @transform_1(%arg0: i32) -> (i32, i32, i32) {
    %c0_i32 = arith.constant 0 : i32
    %c0_i32_0 = arith.constant 0 : i32
    %c0_i32_1 = arith.constant 0 : i32
    %c0_i32_2 = arith.constant 0 : i32
    return %c0_i32, %c0_i32_0, %c0_i32_1 : i32, i32, i32
  }
  func.func @transform_2(%arg0: i32) -> (i32, i32, i32) {
    %c0_i32 = arith.constant 0 : i32
    %c0_i32_0 = arith.constant 0 : i32
    %c0_i32_1 = arith.constant 0 : i32
    %c0_i32_2 = arith.constant 0 : i32
    return %c0_i32, %c0_i32_0, %c0_i32_1 : i32, i32, i32
  }
  func.func @transform_3(%arg0: i32) -> (i32, i32, i32) {
    %c0_i32 = arith.constant 0 : i32
    %c0_i32_0 = arith.constant 0 : i32
    %c0_i32_1 = arith.constant 0 : i32
    %c0_i32_2 = arith.constant 0 : i32
    return %c0_i32, %c0_i32_0, %c0_i32_1 : i32, i32, i32
  }
  func.func @transform_4(%arg0: i32) -> (i32, i32, i32) {
    %c0_i32 = arith.constant 0 : i32
    %c0_i32_0 = arith.constant 0 : i32
    %c0_i32_1 = arith.constant 0 : i32
    %c0_i32_2 = arith.constant 0 : i32
    return %c0_i32, %c0_i32_0, %c0_i32_1 : i32, i32, i32
  }
  func.func @transform_5(%arg0: i32) -> (i32, i32) {
    %c0_i32 = arith.constant 0 : i32
    %c0_i32_0 = arith.constant 0 : i32
    %c0_i32_1 = arith.constant 0 : i32
    return %c0_i32, %c0_i32_0 : i32, i32
  }
  func.func @transform_6(%arg0: i32) -> (i32, i32) {
    %c0_i32 = arith.constant 0 : i32
    %c0_i32_0 = arith.constant 0 : i32
    return %arg0, %c0_i32 : i32, i32
  }
}

</mosaic_0001>

<bundles_post_ra>
// kernel: tpu_custom_call.1
= control target key start
LH: loop header
LB: loop body
LE: loop exit
PB: predicated region body
PF: predicated region fallthrough
CT: control target
= control target key end

     0   :  { %v2318_v1 = vmov 0.0   ;;  %vm2319_vm0 = vmmov 0   ;;  %vm48_vm1 = vcmask 261120   ;;  %s2666_s0 = inlined_call_operand.vmem [shape: bf16[16,32], index: 0, kind: input, shape index: {}]   ;;  %s2667_s1 = inlined_call_operand.vmem [shape: bf16[4,32,16], index: 1, kind: input, shape index: {}]   ;;  %s2668_s2 = inlined_call_operand.vmem [shape: bf16[4,32,16], index: 2, kind: input, shape index: {}]   ;;  %s2669_s3 = inlined_call_operand.vmem [shape: bf16[4,32,16], index: 3, kind: input, shape index: {}]   ;;  %s2670_s4 = inlined_call_operand.vmem [shape: bf16[4,16,32], index: 4, kind: input, shape index: {}]   ;;  %s2671_s5 = inlined_call_operand.vmem [shape: f32[1,32], index: 5, kind: input, shape index: {}]   ;;  %s2672_s6 = inlined_call_operand.hbm [shape: f32[16,32], index: 6, kind: output, shape index: {}]  }
   0x1   :  { %v2235_v0 = vld [vmem:[%s2668_s2 + $0x8] sm:$0xff]   ;;  %2022 = vmatprep.subr.bf16.mxu1 %v2318_v1  ;;  %2014 = vmatprep.subr.bf16.mxu0 %v2318_v1  ;;  %v2237_v3 = vld [vmem:[%s2668_s2] sm:$0xff]  }
   0x2   :  { %v2236_v2 = vld [vmem:[%s2667_s1 + $0x8] sm:$0xff]   ;;  %2023 = vmatpush3.bf16.msra.mxu1 %v2235_v0  ;;  %2026 = vmatprep.mubr.msk.bf16.mxu1 %vm2319_vm0, %v2318_v1  ;;  %v2238_v4 = vld [vmem:[%s2667_s1] sm:$0xff]  }
   0x3   :  { %2015 = vmatpush3.bf16.msra.mxu0 %v2236_v2  ;;  %2024 = vmatprep.subr.bf16.mxu1 %v2318_v1  ;;  %v2381_v5 = vld [vmem:[%s2666_s0] sm:$0xff]   ;;  %v2240_v6 = vld [vmem:[%s2669_s3 + $0x8] sm:$0xff]  }
   0x4   :  { %2016 = vmatprep.subr.bf16.mxu0 %v2318_v1  ;;  %2018 = vmatprep.mubr.msk.bf16.mxu0 %vm2319_vm0, %v2318_v1  ;;  %v2241_v7 = vld [vmem:[%s2669_s3] sm:$0xff]  }
   0x6   :  { %2025 = vmatpush3.bf16.msra.mxu1 %v2237_v3 }
   0x7   :  { %2017 = vmatpush3.bf16.msra.mxu0 %v2238_v4  ;;  %2038 = vmatprep.subr.bf16.mxu1 %v2318_v1 }
   0x8   :  { %2030 = vmatprep.subr.bf16.mxu0 %v2318_v1 }
   0x9   :  { %2027 = vmatmul.mubr.msk.bf16.vlgmr.msra.gmra.mxu1 %vm48_vm1, %v2381_v5 }
   0xa   :  { %2019 = vmatmul.mubr.msk.bf16.vlgmr.msra.gmra.mxu0 %vm48_vm1, %v2381_v5  ;;  %2040 = vmatprep.mubr.msk.bf16.mxu1 %vm2319_vm0, %v2318_v1 }
   0xb   :  { %2031 = vmatpush3.bf16.msra.mxu0 %v2240_v6  ;;  %2034 = vmatprep.mubr.msk.bf16.mxu0 %vm2319_vm0, %v2318_v1 }
   0xc   :  { %2032 = vmatprep.subr.bf16.mxu0 %v2318_v1 }
   0xf   :  { %2033 = vmatpush3.bf16.msra.mxu0 %v2241_v7 }
  0x10   :  { %2044 = vmatprep.subr.bf16.mxu0 %v2318_v1 }
  0x12   :  { %2035 = vmatmul.mubr.msk.bf16.vlgmr.msra.gmra.mxu0 %vm48_vm1, %v2381_v5 }
  0x13   :  { %2046 = vmatprep.mubr.msk.bf16.mxu0 %vm2319_vm0, %v2318_v1 }
  0x14   :  { %11 = vsyncpa [#allocation3], 0  ;;  %vm213_vm2 = vcmask 130048   ;;  %vm334_vm3 = vcmask 1043456   ;;  %vm306_vm4 = vcmask 64512   ;;  %v2242_v54 = vld [vmem:[%s2668_s2 + $0x18] sm:$0xff]  }
  0x15   :  { %v2243_v58 = vld [vmem:[%s2667_s1 + $0x18] sm:$0xff]   ;;  %v2244_v59 = vld [vmem:[%s2668_s2 + $0x10] sm:$0xff]  }
  0x16   :  { %v2245_v61 = vld [vmem:[%s2667_s1 + $0x10] sm:$0xff]   ;;  %v2246_v62 = vld [vmem:[%s2669_s3 + $0x18] sm:$0xff]  }
  0x17   :  { %v2247_v63 = vld [vmem:[%s2669_s3 + $0x10] sm:$0xff]  }
  0xc9   :  { %v143_v8 = vpop.f32.mrf.mxu1 }
  0xca   :  { %v209_v9 = vpack.c.bf16 %v143_v8, %v143_v8  ;;  %v86_v10 = vpop.f32.mrf.mxu0 }
  0xcb   :  { %v2028_v11 = vpop.f32.mrf.mxu1  ;;  %v207_v18 = vpack.c.bf16 %v86_v10, %v86_v10 }
  0xcc   :  { %v218_v12 = vsel %vm213_vm2, %v209_v9, 0  ;;  %v2020_v13 = vpop.f32.mrf.mxu0 }
  0xcd   :  { %v146_v14 = vpop.f32.mrf.mxu1  ;;  %2039 = vmatpush3.bf16.xpose.msra.mxu1 %v218_v12 }
  0xce   :  { %v210_v15 = vpack.c.bf16 %v146_v14, %v146_v14  ;;  %v89_v16 = vpop.f32.mrf.mxu0  ;;  %2050 = vmatprep.subr.bf16.mxu1 %v2318_v1 }
  0xcf   :  { %v2029_v17 = vpop.f32.mrf.mxu1  ;;  %v208_v25 = vpack.c.bf16 %v89_v16, %v89_v16 }
  0xd0   :  { %v264_v19 = vsel %vm213_vm2, %v210_v15, 0  ;;  %v2021_v20 = vpop.f32.mrf.mxu0 }
  0xd1   :  { %2045 = vmatpush3.bf16.xpose.msra.mxu0 %v264_v19 }
  0xd2   :  { %v200_v21 = vpop.f32.mrf.mxu0  ;;  %2056 = vmatprep.subr.bf16.mxu0 %v2318_v1 }
  0xd3   :  { %v211_v22 = vpack.c.bf16 %v200_v21, %v200_v21 }
  0xd4   :  { %2041 = vmatmul.mubr.msk.bf16.vlgmr.msra.gmra.mxu1 %vm213_vm2, %v207_v18  ;;  %v2036_v23 = vpop.f32.mrf.mxu0 }
  0xd5   :  { %v336_v24 = vsel %vm334_vm3, %v211_v22, 0  ;;  %2052 = vmatprep.mubr.msk.bf16.mxu1 %vm2319_vm0, %v2318_v1 }
  0xd6   :  { %v203_v26 = vpop.f32.mrf.mxu0  ;;  %2051 = vmatpush3.bf16.msra.mxu1 %v336_v24 }
  0xd7   :  { %v212_v27 = vpack.c.bf16 %v203_v26, %v203_v26  ;;  %2062 = vmatprep.subr.bf16.mxu1 %v2318_v1 }
  0xd8   :  { %2047 = vmatmul.mubr.msk.bf16.vlgmr.msra.gmra.mxu0 %vm213_vm2, %v208_v25  ;;  %v2037_v28 = vpop.f32.mrf.mxu0 }
  0xd9   :  { %v382_v29 = vsel %vm334_vm3, %v212_v27, 0  ;;  %2058 = vmatprep.mubr.msk.bf16.mxu0 %vm2319_vm0, %v2318_v1 }
  0xda   :  { %2057 = vmatpush3.bf16.msra.mxu0 %v382_v29 }
  0xdb   :  { %2070 = vmatprep.subr.bf16.mxu0 %v2318_v1 }
 0x194   :  { %v254_v30 = vpop.f32.mrf.mxu1 }
 0x195   :  { %v307_v38 = vsel %vm306_vm4, %v254_v30, -inf }
 0x196   :  { %v2042_v31 = vpop.f32.mrf.mxu1 }
 0x198   :  { %v257_v32 = vpop.f32.mrf.mxu1  ;;  %v300_v33 = vpop.f32.mrf.mxu0 }
 0x199   :  { %v310_v34 = vsel %vm306_vm4, %v300_v33, -inf }
 0x19a   :  { %v2043_v35 = vpop.f32.mrf.mxu1  ;;  %311 = vmax.xlane.f32.xlu0 %v310_v34  ;;  %v2048_v36 = vpop.f32.mrf.mxu0 }
 0x19c   :  { %v303_v37 = vpop.f32.mrf.mxu0 }
 0x19e   :  { %308 = vmax.xlane.f32.xlu0 %v307_v38  ;;  %v2049_v39 = vpop.f32.mrf.mxu0 }
 0x223   :  { %v312_v40 = vpop.xlane.xlu0 %311 }
 0x224   :  { %v314_v41 = vsub.f32 %v300_v33, %v312_v40 }
 0x226   :  { %v317_v42 = vmul.f32 1.442695, %v314_v41 }
 0x227   :  { %v309_v43 = vpop.xlane.xlu0 %308 }
 0x228   :  { %2264 = vpow2.f32 %v317_v42  ;;  %v313_v44 = vsub.f32 %v254_v30, %v309_v43 }
 0x22a   :  { %v315_v45 = vmul.f32 1.442695, %v313_v44 }
 0x22c   :  { %2266 = vpow2.f32 %v315_v45 }
 0x235   :  { %v2265_v46 = vpop.eup %2264 }
 0x236   :  { %v322_v47 = vsel %vm306_vm4, %v2265_v46, 0.0 }
 0x237   :  { %323 = vadd.xlane.f32.xlu1 %v322_v47 }
 0x239   :  { %v2267_v48 = vpop.eup %2266 }
 0x23a   :  { %v319_v49 = vsel %vm306_vm4, %v2267_v48, 0.0 }
 0x23b   :  { %320 = vadd.xlane.f32.xlu1 %v319_v49 }
 0x2c0   :  { %v324_v50 = vpop.xlane.xlu1 %323 }
 0x2c1   :  { %2268 = vrcp.f32 %v324_v50 }
 0x2c4   :  { %v321_v51 = vpop.xlane.xlu1 %320 }
 0x2c5   :  { %2270 = vrcp.f32 %v321_v51 }
 0x2ce   :  { %v2269_v52 = vpop.eup %2268 }
 0x2cf   :  { %v328_v53 = vmul.f32 %v2269_v52, %v2265_v46 }
 0x2d1   :  { %v330_v55 = vpack.c.bf16 %v328_v53, %v328_v53 }
 0x2d2   :  { %v2271_v56 = vpop.eup %2270 }
 0x2d3   :  { %2059 = vmatmul.mubr.msk.bf16.vlgmr.msra.gmra.mxu0 %vm306_vm4, %v330_v55  ;;  %v327_v57 = vmul.f32 %v2271_v56, %v2267_v48 }
 0x2d4   :  { %2071 = vmatpush3.bf16.msra.mxu0 %v2242_v54  ;;  %2074 = vmatprep.mubr.msk.bf16.mxu0 %vm2319_vm0, %v2318_v1 }
 0x2d5   :  { %v329_v60 = vpack.c.bf16 %v327_v57, %v327_v57  ;;  %2072 = vmatprep.subr.bf16.mxu0 %v2318_v1 }
 0x2d7   :  { %2053 = vmatmul.mubr.msk.bf16.vlgmr.msra.gmra.mxu1 %vm306_vm4, %v329_v60  ;;  %v2248_v60 = vld [vmem:[%s2670_s4] sm:$0xff]  }
 0x2d8   :  { %2063 = vmatpush3.bf16.msra.mxu1 %v2243_v58  ;;  %2073 = vmatpush3.bf16.msra.mxu0 %v2244_v59 }
 0x2d9   :  { %2064 = vmatprep.subr.bf16.mxu1 %v2318_v1  ;;  %2066 = vmatprep.mubr.msk.bf16.mxu1 %vm2319_vm0, %v2318_v1 }
 0x2da   :  { %2086 = vmatprep.subr.bf16.mxu0 %v2318_v1 }
 0x2db   :  { %2075 = vmatmul.mubr.msk.bf16.vlgmr.msra.gmra.mxu0 %vm48_vm1, %v2381_v5 }
 0x2dc   :  { %2065 = vmatpush3.bf16.msra.mxu1 %v2245_v61  ;;  %2088 = vmatprep.mubr.msk.bf16.mxu0 %vm2319_vm0, %v2318_v1 }
 0x2dd   :  { %2078 = vmatprep.subr.bf16.mxu1 %v2318_v1 }
 0x2df   :  { %2067 = vmatmul.mubr.msk.bf16.vlgmr.msra.gmra.mxu1 %vm48_vm1, %v2381_v5 }
 0x2e0   :  { %2082 = vmatprep.mubr.msk.bf16.mxu1 %vm2319_vm0, %v2318_v1  ;;  %2079 = vmatpush3.bf16.msra.mxu1 %v2246_v62  ;;  %v2249_v62 = vld [vmem:[%s2668_s2 + $0x28] sm:$0xff]  }
 0x2e1   :  { %2080 = vmatprep.subr.bf16.mxu1 %v2318_v1 }
 0x2e4   :  { %2081 = vmatpush3.bf16.msra.mxu1 %v2247_v63  ;;  %v2250_v63 = vld [vmem:[%s2668_s2 + $0x20] sm:$0xff]  }
 0x2e5   :  { %2092 = vmatprep.subr.bf16.mxu1 %v2318_v1 }
 0x2e7   :  { %2083 = vmatmul.mubr.msk.bf16.vlgmr.msra.gmra.mxu1 %vm48_vm1, %v2381_v5 }
 0x2e8   :  { %2094 = vmatprep.mubr.msk.bf16.mxu1 %vm2319_vm0, %v2318_v1 }
 0x393   :  { %v2465_v0 = vpop.f32.mrf.mxu0 }
 0x395   :  { %v2060_v2 = vpop.f32.mrf.mxu0 }
 0x397   :  { %v2467_v3 = vpop.f32.mrf.mxu1  ;;  %v421_v4 = vpop.f32.mrf.mxu0 }
 0x398   :  { %v424_v6 = vpack.c.bf16 %v2465_v0, %v2467_v3  ;;  %v2251_v0 = vld [vmem:[%s2670_s4 + $0x8] sm:$0xff]  }
 0x399   :  { %v2054_v7 = vpop.f32.mrf.mxu1  ;;  %v2061_v8 = vpop.f32.mrf.mxu0 }
 0x39a   :  { %v2252_v7 = vld [vmem:[%s2667_s1 + $0x28] sm:$0xff]  }
 0x39b   :  { %v375_v9 = vpop.f32.mrf.mxu1  ;;  %v536_v10 = vpop.f32.mrf.mxu0 }
 0x39c   :  { %v603_v11 = vpack.c.bf16 %v536_v10, %v536_v10 }
 0x39d   :  { %v2055_v12 = vpop.f32.mrf.mxu1  ;;  %v2076_v13 = vpop.f32.mrf.mxu0 }
 0x39e   :  { %v611_v14 = vsel %vm213_vm2, %v603_v11, 0  ;;  %v2253_v12 = vld [vmem:[%s2667_s1 + $0x20] sm:$0xff]  }
 0x39f   :  { %v478_v15 = vpop.f32.mrf.mxu1  ;;  %v539_v16 = vpop.f32.mrf.mxu0  ;;  %2087 = vmatpush3.bf16.xpose.msra.mxu0 %v611_v14 }
 0x3a0   :  { %v604_v17 = vpack.c.bf16 %v539_v16, %v539_v16  ;;  %2098 = vmatprep.subr.bf16.mxu0 %v2318_v1  ;;  %v601_v20 = vpack.c.bf16 %v478_v15, %v478_v15  ;;  %v2254_v15 = vld [vmem:[%s2669_s3 + $0x28] sm:$0xff]  }
 0x3a1   :  { %v2068_v18 = vpop.f32.mrf.mxu1  ;;  %v2077_v19 = vpop.f32.mrf.mxu0 }
 0x3a2   :  { %v657_v21 = vsel %vm213_vm2, %v604_v17, 0  ;;  %v2255_v18 = vld [vmem:[%s2669_s3 + $0x20] sm:$0xff]  }
 0x3a3   :  { %v481_v22 = vpop.f32.mrf.mxu1  ;;  %2093 = vmatpush3.bf16.xpose.msra.mxu1 %v657_v21 }
 0x3a4   :  { %2104 = vmatprep.subr.bf16.mxu1 %v2318_v1  ;;  %v602_v24 = vpack.c.bf16 %v481_v22, %v481_v22 }
 0x3a5   :  { %v2069_v23 = vpop.f32.mrf.mxu1 }
 0x3a6   :  { %2089 = vmatmul.mubr.msk.bf16.vlgmr.msra.gmra.mxu0 %vm213_vm2, %v601_v20 }
 0x3a7   :  { %2100 = vmatprep.mubr.msk.bf16.mxu0 %vm2319_vm0, %v2318_v1  ;;  %v594_v25 = vpop.f32.mrf.mxu1 }
 0x3a8   :  { %v605_v26 = vpack.c.bf16 %v594_v25, %v594_v25 }
 0x3a9   :  { %v2084_v27 = vpop.f32.mrf.mxu1 }
 0x3aa   :  { %2095 = vmatmul.mubr.msk.bf16.vlgmr.msra.gmra.mxu1 %vm213_vm2, %v602_v24  ;;  %v727_v28 = vsel %vm334_vm3, %v605_v26, 0 }
 0x3ab   :  { %2106 = vmatprep.mubr.msk.bf16.mxu1 %vm2319_vm0, %v2318_v1  ;;  %v597_v29 = vpop.f32.mrf.mxu1  ;;  %2099 = vmatpush3.bf16.msra.mxu0 %v727_v28 }
 0x3ac   :  { %v606_v30 = vpack.c.bf16 %v597_v29, %v597_v29  ;;  %2110 = vmatprep.subr.bf16.mxu0 %v2318_v1 }
 0x3ad   :  { %v2085_v31 = vpop.f32.mrf.mxu1 }
 0x3ae   :  { %v773_v32 = vsel %vm334_vm3, %v606_v30, 0 }
 0x3af   :  { %2105 = vmatpush3.bf16.msra.mxu1 %v773_v32 }
 0x3b0   :  { %2116 = vmatprep.subr.bf16.mxu1 %v2318_v1 }
 0x466   :  { %v647_v33 = vpop.f32.mrf.mxu0 }
 0x467   :  { %v699_v34 = vsel %vm306_vm4, %v647_v33, -inf }
 0x468   :  { %700 = vmax.xlane.f32.xlu0 %v699_v34  ;;  %v2090_v35 = vpop.f32.mrf.mxu0 }
 0x46a   :  { %v650_v36 = vpop.f32.mrf.mxu0  ;;  %v693_v37 = vpop.f32.mrf.mxu1 }
 0x46b   :  { %v702_v38 = vsel %vm306_vm4, %v693_v37, -inf }
 0x46c   :  { %703 = vmax.xlane.f32.xlu1 %v702_v38  ;;  %v2091_v39 = vpop.f32.mrf.mxu0  ;;  %v2096_v40 = vpop.f32.mrf.mxu1 }
 0x46e   :  { %v696_v41 = vpop.f32.mrf.mxu1 }
 0x470   :  { %v2097_v42 = vpop.f32.mrf.mxu1 }
 0x4f1   :  { %v701_v43 = vpop.xlane.xlu0 %700 }
 0x4f2   :  { %v705_v44 = vsub.f32 %v647_v33, %v701_v43 }
 0x4f4   :  { %v707_v45 = vmul.f32 1.442695, %v705_v44 }
 0x4f5   :  { %v704_v46 = vpop.xlane.xlu1 %703 }
 0x4f6   :  { %2272 = vpow2.f32 %v707_v45  ;;  %v706_v47 = vsub.f32 %v693_v37, %v704_v46 }
 0x4f8   :  { %v709_v48 = vmul.f32 1.442695, %v706_v47 }
 0x4fa   :  { %2274 = vpow2.f32 %v709_v48 }
 0x503   :  { %v2273_v49 = vpop.eup %2272 }
 0x504   :  { %v711_v50 = vsel %vm306_vm4, %v2273_v49, 0.0 }
 0x505   :  { %712 = vadd.xlane.f32.xlu0 %v711_v50 }
 0x507   :  { %v2275_v51 = vpop.eup %2274 }
 0x508   :  { %v714_v52 = vsel %vm306_vm4, %v2275_v51, 0.0 }
 0x509   :  { %715 = vadd.xlane.f32.xlu1 %v714_v52 }
 0x58e   :  { %v713_v53 = vpop.xlane.xlu0 %712 }
 0x58f   :  { %2276 = vrcp.f32 %v713_v53 }
 0x592   :  { %v716_v54 = vpop.xlane.xlu1 %715 }
 0x593   :  { %2278 = vrcp.f32 %v716_v54 }
 0x59c   :  { %v2277_v55 = vpop.eup %2276 }
 0x59d   :  { %v719_v56 = vmul.f32 %v2277_v55, %v2273_v49 }
 0x59f   :  { %v721_v57 = vpack.c.bf16 %v719_v56, %v719_v56 }
 0x5a0   :  { %v2279_v58 = vpop.eup %2278 }
 0x5a1   :  { %2101 = vmatmul.mubr.msk.bf16.vlgmr.msra.gmra.mxu0 %vm306_vm4, %v721_v57  ;;  %v720_v59 = vmul.f32 %v2279_v58, %v2275_v51 }
 0x5a2   :  { %2112 = vmatprep.mubr.msk.bf16.mxu0 %vm2319_vm0, %v2318_v1  ;;  %2111 = vmatpush3.bf16.msra.mxu0 %v2251_v0 }
 0x5a3   :  { %v722_v61 = vpack.c.bf16 %v720_v59, %v720_v59  ;;  %2122 = vmatprep.subr.bf16.mxu0 %v2318_v1 }
 0x5a5   :  { %2107 = vmatmul.mubr.msk.bf16.vlgmr.msra.gmra.mxu1 %vm306_vm4, %v722_v61 }
 0x5a6   :  { %2117 = vmatpush3.bf16.msra.mxu1 %v2248_v60  ;;  %2118 = vmatprep.mubr.msk.bf16.mxu1 %vm2319_vm0, %v2318_v1 }
 0x5a7   :  { %2130 = vmatprep.subr.bf16.mxu1 %v2318_v1 }
 0x5ad   :  { %2119 = vmatmul.mubr.msk.bf16.vlgmr.msra.gmra.mxu1 %vm213_vm2, %v424_v6 }
 0x5ae   :  { %2131 = vmatpush3.bf16.msra.mxu1 %v2249_v62  ;;  %2134 = vmatprep.mubr.msk.bf16.mxu1 %vm2319_vm0, %v2318_v1 }
 0x5af   :  { %2132 = vmatprep.subr.bf16.mxu1 %v2318_v1 }
 0x5b2   :  { %2133 = vmatpush3.bf16.msra.mxu1 %v2250_v63 }
 0x5b3   :  { %2146 = vmatprep.subr.bf16.mxu1 %v2318_v1 }
 0x5b5   :  { %2135 = vmatmul.mubr.msk.bf16.vlgmr.msra.gmra.mxu1 %vm48_vm1, %v2381_v5 }
 0x5b6   :  { %2148 = vmatprep.mubr.msk.bf16.mxu1 %vm2319_vm0, %v2318_v1 }
 0x661   :  { %v763_v2 = vpop.f32.mrf.mxu0 }
 0x663   :  { %v2102_v3 = vpop.f32.mrf.mxu0 }
 0x665   :  { %v766_v4 = vpop.f32.mrf.mxu0  ;;  %v809_v6 = vpop.f32.mrf.mxu1 }
 0x666   :  { %v815_v8 = vpack.c.bf16 %v809_v6, %v763_v2 }
 0x667   :  { %v2103_v9 = vpop.f32.mrf.mxu0  ;;  %v2108_v10 = vpop.f32.mrf.mxu1 }
 0x668   :  { %2113 = vmatmul.mubr.msk.bf16.vlgmr.msra.gmra.mxu0 %vm213_vm2, %v815_v8 }
 0x669   :  { %v812_v11 = vpop.f32.mrf.mxu1  ;;  %2123 = vmatpush3.bf16.msra.mxu0 %v2252_v7  ;;  %2126 = vmatprep.mubr.msk.bf16.mxu0 %vm2319_vm0, %v2318_v1 }
 0x66a   :  { %2124 = vmatprep.subr.bf16.mxu0 %v2318_v1 }
 0x66b   :  { %v2109_v13 = vpop.f32.mrf.mxu1 }
 0x66c   :  { %v2258_v13 = vld [vmem:[%s2667_s1 + $0x38] sm:$0xff]  }
 0x66d   :  { %v2531_v14 = vpop.f32.mrf.mxu1  ;;  %2125 = vmatpush3.bf16.msra.mxu0 %v2253_v12  ;;  %v2256_v12 = vld [vmem:[%s2670_s4 + $0x10] sm:$0xff]  }
 0x66e   :  { %2138 = vmatprep.subr.bf16.mxu0 %v2318_v1 }
 0x66f   :  { %v2120_v16 = vpop.f32.mrf.mxu1 }
 0x670   :  { %2127 = vmatmul.mubr.msk.bf16.vlgmr.msra.gmra.mxu0 %vm48_vm1, %v2381_v5 }
 0x671   :  { %v2539_v17 = vpop.f32.mrf.mxu1  ;;  %2139 = vmatpush3.bf16.msra.mxu0 %v2254_v15  ;;  %2142 = vmatprep.mubr.msk.bf16.mxu0 %vm2319_vm0, %v2318_v1  ;;  %v2260_v15 = vld [vmem:[%s2667_s1 + $0x30] sm:$0xff]  }
 0x672   :  { %2140 = vmatprep.subr.bf16.mxu0 %v2318_v1 }
 0x673   :  { %v2121_v19 = vpop.f32.mrf.mxu1 }
 0x675   :  { %v1028_v20 = vpop.f32.mrf.mxu1  ;;  %2141 = vmatpush3.bf16.msra.mxu0 %v2255_v18 }
 0x676   :  { %v1095_v21 = vpack.c.bf16 %v1028_v20, %v1028_v20  ;;  %2152 = vmatprep.subr.bf16.mxu0 %v2318_v1 }
 0x677   :  { %v2136_v22 = vpop.f32.mrf.mxu1 }
 0x678   :  { %v1103_v23 = vsel %vm213_vm2, %v1095_v21, 0  ;;  %2143 = vmatmul.mubr.msk.bf16.vlgmr.msra.gmra.mxu0 %vm48_vm1, %v2381_v5  ;;  %v2257_v21 = vld [vmem:[%s2668_s2 + $0x38] sm:$0xff]  }
 0x679   :  { %v1031_v24 = vpop.f32.mrf.mxu1  ;;  %2147 = vmatpush3.bf16.xpose.msra.mxu1 %v1103_v23  ;;  %2154 = vmatprep.mubr.msk.bf16.mxu0 %vm2319_vm0, %v2318_v1 }
 0x67a   :  { %v1096_v25 = vpack.c.bf16 %v1031_v24, %v1031_v24  ;;  %2158 = vmatprep.subr.bf16.mxu1 %v2318_v1 }
 0x67b   :  { %v2137_v26 = vpop.f32.mrf.mxu1 }
 0x67c   :  { %v1149_v27 = vsel %vm213_vm2, %v1096_v25, 0  ;;  %v2259_v26 = vld [vmem:[%s2668_s2 + $0x30] sm:$0xff]  }
 0x67d   :  { %2153 = vmatpush3.bf16.xpose.msra.mxu0 %v1149_v27 }
 0x67e   :  { %2164 = vmatprep.subr.bf16.mxu0 %v2318_v1 }
 0x728   :  { %v2556_v28 = vpop.f32.mrf.mxu0 }
 0x72a   :  { %v2114_v29 = vpop.f32.mrf.mxu0 }
 0x72b   :  { %v2261_v29 = vld [vmem:[%s2669_s3 + $0x38] sm:$0xff]  }
 0x72c   :  { %v2558_v30 = vpop.f32.mrf.mxu0 }
 0x72e   :  { %v2115_v31 = vpop.f32.mrf.mxu0 }
 0x72f   :  { %v2262_v31 = vld [vmem:[%s2669_s3 + $0x30] sm:$0xff]  }
 0x730   :  { %v970_v32 = vpop.f32.mrf.mxu0 }
 0x731   :  { %v1093_v33 = vpack.c.bf16 %v970_v32, %v970_v32 }
 0x732   :  { %v2128_v34 = vpop.f32.mrf.mxu0 }
 0x733   :  { %2149 = vmatmul.mubr.msk.bf16.vlgmr.msra.gmra.mxu1 %vm213_vm2, %v1093_v33 }
 0x734   :  { %v973_v35 = vpop.f32.mrf.mxu0  ;;  %2160 = vmatprep.mubr.msk.bf16.mxu1 %vm2319_vm0, %v2318_v1 }
 0x735   :  { %v1094_v36 = vpack.c.bf16 %v973_v35, %v973_v35 }
 0x736   :  { %v2129_v37 = vpop.f32.mrf.mxu0 }
 0x737   :  { %2155 = vmatmul.mubr.msk.bf16.vlgmr.msra.gmra.mxu0 %vm213_vm2, %v1094_v36  ;;  %v913_v36 = vadd.f32 %v2531_v14, %v2556_v28 }
 0x738   :  { %v1086_v38 = vpop.f32.mrf.mxu0  ;;  %2166 = vmatprep.mubr.msk.bf16.mxu0 %vm2319_vm0, %v2318_v1 }
 0x739   :  { %v1097_v39 = vpack.c.bf16 %v1086_v38, %v1086_v38 }
 0x73a   :  { %v2144_v40 = vpop.f32.mrf.mxu0 }
 0x73b   :  { %v1219_v41 = vsel %vm334_vm3, %v1097_v39, 0  ;;  %v916_v40 = vadd.f32 %v2539_v17, %v2558_v30 }
 0x73c   :  { %v1089_v42 = vpop.f32.mrf.mxu0  ;;  %2159 = vmatpush3.bf16.msra.mxu1 %v1219_v41 }
 0x73d   :  { %v1098_v43 = vpack.c.bf16 %v1089_v42, %v1089_v42  ;;  %2170 = vmatprep.subr.bf16.mxu1 %v2318_v1 }
 0x73e   :  { %v2145_v44 = vpop.f32.mrf.mxu0 }
 0x73f   :  { %v1265_v45 = vsel %vm334_vm3, %v1098_v43, 0 }
 0x740   :  { %2165 = vmatpush3.bf16.msra.mxu0 %v1265_v45 }
 0x741   :  { %2176 = vmatprep.subr.bf16.mxu0 %v2318_v1 }
 0x7f3   :  { %v1139_v46 = vpop.f32.mrf.mxu1 }
 0x7f4   :  { %v1191_v47 = vsel %vm306_vm4, %v1139_v46, -inf }
 0x7f5   :  { %1192 = vmax.xlane.f32.xlu0 %v1191_v47  ;;  %v2150_v48 = vpop.f32.mrf.mxu1 }
 0x7f7   :  { %v1142_v49 = vpop.f32.mrf.mxu1  ;;  %v1185_v50 = vpop.f32.mrf.mxu0 }
 0x7f8   :  { %v1194_v51 = vsel %vm306_vm4, %v1185_v50, -inf }
 0x7f9   :  { %v2151_v52 = vpop.f32.mrf.mxu1  ;;  %1195 = vmax.xlane.f32.xlu1 %v1194_v51  ;;  %v2156_v53 = vpop.f32.mrf.mxu0 }
 0x7fb   :  { %v1188_v54 = vpop.f32.mrf.mxu0 }
 0x7fd   :  { %v2157_v55 = vpop.f32.mrf.mxu0 }
 0x87e   :  { %v1193_v56 = vpop.xlane.xlu0 %1192 }
 0x87f   :  { %v1197_v57 = vsub.f32 %v1139_v46, %v1193_v56 }
 0x881   :  { %v1199_v58 = vmul.f32 1.442695, %v1197_v57 }
 0x882   :  { %v1196_v59 = vpop.xlane.xlu1 %1195 }
 0x883   :  { %2280 = vpow2.f32 %v1199_v58  ;;  %v1198_v60 = vsub.f32 %v1185_v50, %v1196_v59 }
 0x885   :  { %v1201_v61 = vmul.f32 1.442695, %v1198_v60 }
 0x887   :  { %2282 = vpow2.f32 %v1201_v61 }
 0x890   :  { %v2281_v62 = vpop.eup %2280 }
 0x891   :  { %v1203_v63 = vsel %vm306_vm4, %v2281_v62, 0.0 }
 0x892   :  { %1204 = vadd.xlane.f32.xlu0 %v1203_v63 }
 0x894   :  { %v2283_v0 = vpop.eup %2282 }
 0x895   :  { %v1206_v2 = vsel %vm306_vm4, %v2283_v0, 0.0 }
 0x896   :  { %1207 = vadd.xlane.f32.xlu1 %v1206_v2 }
 0x91b   :  { %v1205_v3 = vpop.xlane.xlu0 %1204 }
 0x91c   :  { %2284 = vrcp.f32 %v1205_v3 }
 0x91f   :  { %v1208_v4 = vpop.xlane.xlu1 %1207 }
 0x920   :  { %2286 = vrcp.f32 %v1208_v4 }
 0x929   :  { %v2285_v6 = vpop.eup %2284 }
 0x92a   :  { %v1211_v7 = vmul.f32 %v2285_v6, %v2281_v62 }
 0x92c   :  { %v1213_v8 = vpack.c.bf16 %v1211_v7, %v1211_v7 }
 0x92d   :  { %v2287_v9 = vpop.eup %2286 }
 0x92e   :  { %2161 = vmatmul.mubr.msk.bf16.vlgmr.msra.gmra.mxu1 %vm306_vm4, %v1213_v8  ;;  %v1212_v10 = vmul.f32 %v2287_v9, %v2283_v0 }
 0x92f   :  { %2172 = vmatprep.mubr.msk.bf16.mxu1 %vm2319_vm0, %v2318_v1  ;;  %2171 = vmatpush3.bf16.msra.mxu1 %v2256_v12 }
 0x930   :  { %v1214_v11 = vpack.c.bf16 %v1212_v10, %v1212_v10  ;;  %2184 = vmatprep.subr.bf16.mxu1 %v2318_v1 }
 0x932   :  { %2167 = vmatmul.mubr.msk.bf16.vlgmr.msra.gmra.mxu0 %vm306_vm4, %v1214_v11 }
 0x933   :  { %2180 = vmatprep.mubr.msk.bf16.mxu0 %vm2319_vm0, %v2318_v1  ;;  %2177 = vmatpush3.bf16.msra.mxu0 %v2258_v13 }
 0x934   :  { %2178 = vmatprep.subr.bf16.mxu0 %v2318_v1 }
 0x937   :  { %2179 = vmatpush3.bf16.msra.mxu0 %v2260_v15 }
 0x938   :  { %2192 = vmatprep.subr.bf16.mxu0 %v2318_v1 }
 0x93a   :  { %2181 = vmatmul.mubr.msk.bf16.vlgmr.msra.gmra.mxu0 %vm48_vm1, %v2381_v5 }
 0x93b   :  { %2196 = vmatprep.mubr.msk.bf16.mxu0 %vm2319_vm0, %v2318_v1  ;;  %2193 = vmatpush3.bf16.msra.mxu0 %v2261_v29 }
 0x93c   :  { %2194 = vmatprep.subr.bf16.mxu0 %v2318_v1 }
 0x93f   :  { %2195 = vmatpush3.bf16.msra.mxu0 %v2262_v31 }
 0x940   :  { %2206 = vmatprep.subr.bf16.mxu0 %v2318_v1 }
 0x942   :  { %2197 = vmatmul.mubr.msk.bf16.vlgmr.msra.gmra.mxu0 %vm48_vm1, %v2381_v5 }
 0x943   :  { %2208 = vmatprep.mubr.msk.bf16.mxu0 %vm2319_vm0, %v2318_v1 }
 0x9ee   :  { %v1255_v16 = vpop.f32.mrf.mxu1 }
 0x9f0   :  { %v2162_v18 = vpop.f32.mrf.mxu1 }
 0x9f2   :  { %v1258_v19 = vpop.f32.mrf.mxu1  ;;  %v1301_v20 = vpop.f32.mrf.mxu0 }
 0x9f3   :  { %v1307_v22 = vpack.c.bf16 %v1301_v20, %v1255_v16 }
 0x9f4   :  { %v2163_v23 = vpop.f32.mrf.mxu1  ;;  %v2168_v24 = vpop.f32.mrf.mxu0 }
 0x9f5   :  { %2173 = vmatmul.mubr.msk.bf16.vlgmr.msra.gmra.mxu1 %vm213_vm2, %v1307_v22 }
 0x9f6   :  { %v1304_v25 = vpop.f32.mrf.mxu0  ;;  %2185 = vmatpush3.bf16.msra.mxu1 %v2257_v21  ;;  %2188 = vmatprep.mubr.msk.bf16.mxu1 %vm2319_vm0, %v2318_v1 }
 0x9f7   :  { %2186 = vmatprep.subr.bf16.mxu1 %v2318_v1  ;;  %v2263_v25 = vld [vmem:[%s2670_s4 + $0x18] sm:$0xff]   ;;  %s2320_s4 = smov [#allocation2]  }
 0x9f8   :  { %v2169_v27 = vpop.f32.mrf.mxu0  ;;  %s1823_s28 = sshll.u32 %s2320_s4, 4  ;;  %s1824_s28 = int_to_ptr.vmem [resolvable:$true] %s1823_s28 }
 0x9f9   :  { %s2296_s29 = scalar_lea.vmem %s1824_s28, 256  ;;  %p2301_p1 = scmp.lt.s32.totalorder %s1824_s28, %s1824_s28 }
 0x9fa   :  { %2187 = vmatpush3.bf16.msra.mxu1 %v2259_v26  ;;  %v1414_v32 = vpop.f32.mrf.mxu0  ;;  %p2297_p0 = scmp.ne.s32.totalorder %s1824_s28, %s2296_s29  ;;  %p2302_p2 = scmp.lt.s32.totalorder %s2296_s29, %s2296_s29 }
 0x9fb   :  { %2200 = vmatprep.subr.bf16.mxu1 %v2318_v1  ;;  %v1537_v28 = vpack.c.bf16 %v1414_v32, %v1414_v32 }
 0x9fc   :  { %v2182_v33 = vpop.f32.mrf.mxu0  ;;  %p2303_p3 = por %p2302_p2, %p2301_p1 }
 0x9fd   :  { %2189 = vmatmul.mubr.msk.bf16.vlgmr.msra.gmra.mxu1 %vm48_vm1, %v2381_v5 }
 0x9fe   :  { %2202 = vmatprep.mubr.msk.bf16.mxu1 %vm2319_vm0, %v2318_v1  ;;  %v1417_v34 = vpop.f32.mrf.mxu0  ;;  %p2304_p4 = pnand %p2303_p3, %p2297_p0 }
 0x9ff   :  { %v1538_v17 = vpack.c.bf16 %v1417_v34, %v1417_v34 }
 0xa00   :  { %v2183_v35 = vpop.f32.mrf.mxu0 }
 0xa02   :  { %v1530_v30 = vpop.f32.mrf.mxu0 }
 0xa03   :  { %v1541_v50 = vpack.c.bf16 %v1530_v30, %v1530_v30 }
 0xa04   :  { %v2198_v51 = vpop.f32.mrf.mxu0 }
 0xa05   :  { %v1663_v52 = vsel %vm334_vm3, %v1541_v50, 0 }
 0xa06   :  { %v1533_v53 = vpop.f32.mrf.mxu0 }
 0xa07   :  { %v1542_v54 = vpack.c.bf16 %v1533_v53, %v1533_v53 }
 0xa08   :  { %v2199_v55 = vpop.f32.mrf.mxu0 }
 0xa09   :  { %v1709_v56 = vsel %vm334_vm3, %v1542_v54, 0 }
 0xab5   :  { %v1354_v37 = vpop.f32.mrf.mxu1 }
 0xab6   :  { %v2625_v38 = vadd.f32 %v1354_v37, %v913_v36  ;;  %v1937_v37 = vld [vmem:[%s2671_s5] ss:$0 sm:$0xff] }
 0xab7   :  { %v2174_v39 = vpop.f32.mrf.mxu1 }
 0xab9   :  { %v1357_v41 = vpop.f32.mrf.mxu1 }
 0xaba   :  { %v2629_v42 = vadd.f32 %v1357_v41, %v916_v40 }
 0xabb   :  { %v2175_v5 = vpop.f32.mrf.mxu1 }
 0xabd   :  { %v1472_v43 = vpop.f32.mrf.mxu1 }
 0xabe   :  { %v1539_v44 = vpack.c.bf16 %v1472_v43, %v1472_v43 }
 0xabf   :  { %v2190_v45 = vpop.f32.mrf.mxu1 }
 0xac0   :  { %v1547_v46 = vsel %vm213_vm2, %v1539_v44, 0 }
 0xac1   :  { %v1475_v47 = vpop.f32.mrf.mxu1  ;;  %2201 = vmatpush3.bf16.xpose.msra.mxu1 %v1547_v46 }
 0xac2   :  { %v1540_v48 = vpack.c.bf16 %v1475_v47, %v1475_v47  ;;  %2212 = vmatprep.subr.bf16.mxu1 %v2318_v1 }
 0xac3   :  { %v2191_v14 = vpop.f32.mrf.mxu1 }
 0xac4   :  { %v1593_v49 = vsel %vm213_vm2, %v1540_v48, 0 }
 0xac5   :  { %2207 = vmatpush3.bf16.xpose.msra.mxu0 %v1593_v49 }
 0xac6   :  { %2218 = vmatprep.subr.bf16.mxu0 %v2318_v1 }
 0xac8   :  { %2203 = vmatmul.mubr.msk.bf16.vlgmr.msra.gmra.mxu1 %vm213_vm2, %v1537_v28 }
 0xac9   :  { %2214 = vmatprep.mubr.msk.bf16.mxu1 %vm2319_vm0, %v2318_v1  ;;  %2213 = vmatpush3.bf16.msra.mxu1 %v1663_v52 }
 0xaca   :  { %2224 = vmatprep.subr.bf16.mxu1 %v2318_v1 }
 0xacc   :  { %2209 = vmatmul.mubr.msk.bf16.vlgmr.msra.gmra.mxu0 %vm213_vm2, %v1538_v17 }
 0xacd   :  { %2220 = vmatprep.mubr.msk.bf16.mxu0 %vm2319_vm0, %v2318_v1  ;;  %2219 = vmatpush3.bf16.msra.mxu0 %v1709_v56 }
 0xb88   :  { %v1583_v57 = vpop.f32.mrf.mxu1 }
 0xb89   :  { %v1635_v58 = vsel %vm306_vm4, %v1583_v57, -inf }
 0xb8a   :  { %1636 = vmax.xlane.f32.xlu0 %v1635_v58  ;;  %v2204_v59 = vpop.f32.mrf.mxu1 }
 0xb8c   :  { %v1586_v60 = vpop.f32.mrf.mxu1  ;;  %v1629_v61 = vpop.f32.mrf.mxu0 }
 0xb8d   :  { %v1638_v62 = vsel %vm306_vm4, %v1629_v61, -inf }
 0xb8e   :  { %v2205_v63 = vpop.f32.mrf.mxu1  ;;  %1639 = vmax.xlane.f32.xlu1 %v1638_v62  ;;  %v2210_v0 = vpop.f32.mrf.mxu0 }
 0xb90   :  { %v1632_v2 = vpop.f32.mrf.mxu0 }
 0xb92   :  { %v2211_v3 = vpop.f32.mrf.mxu0 }
 0xc13   :  { %v1637_v4 = vpop.xlane.xlu0 %1636 }
 0xc14   :  { %v1641_v6 = vsub.f32 %v1583_v57, %v1637_v4 }
 0xc16   :  { %v1643_v7 = vmul.f32 1.442695, %v1641_v6 }
 0xc17   :  { %v1640_v8 = vpop.xlane.xlu1 %1639 }
 0xc18   :  { %2288 = vpow2.f32 %v1643_v7  ;;  %v1642_v9 = vsub.f32 %v1629_v61, %v1640_v8 }
 0xc1a   :  { %v1645_v10 = vmul.f32 1.442695, %v1642_v9 }
 0xc1c   :  { %2290 = vpow2.f32 %v1645_v10 }
 0xc25   :  { %v2289_v11 = vpop.eup %2288 }
 0xc26   :  { %v1647_v12 = vsel %vm306_vm4, %v2289_v11, 0.0 }
 0xc27   :  { %1648 = vadd.xlane.f32.xlu0 %v1647_v12 }
 0xc29   :  { %v2291_v13 = vpop.eup %2290 }
 0xc2a   :  { %v1650_v15 = vsel %vm306_vm4, %v2291_v13, 0.0 }
 0xc2b   :  { %1651 = vadd.xlane.f32.xlu1 %v1650_v15 }
 0xcb0   :  { %v1649_v16 = vpop.xlane.xlu0 %1648 }
 0xcb1   :  { %2292 = vrcp.f32 %v1649_v16 }
 0xcb4   :  { %v1652_v18 = vpop.xlane.xlu1 %1651 }
 0xcb5   :  { %2294 = vrcp.f32 %v1652_v18 }
 0xcbe   :  { %v2293_v19 = vpop.eup %2292 }
 0xcbf   :  { %v1655_v20 = vmul.f32 %v2293_v19, %v2289_v11 }
 0xcc1   :  { %v1657_v21 = vpack.c.bf16 %v1655_v20, %v1655_v20 }
 0xcc2   :  { %v2295_v22 = vpop.eup %2294 }
 0xcc3   :  { %2215 = vmatmul.mubr.msk.bf16.vlgmr.msra.gmra.mxu1 %vm306_vm4, %v1657_v21  ;;  %v1656_v23 = vmul.f32 %v2295_v22, %v2291_v13 }
 0xcc4   :  { %2226 = vmatprep.mubr.msk.bf16.mxu1 %vm2319_vm0, %v2318_v1  ;;  %2225 = vmatpush3.bf16.msra.mxu1 %v2263_v25 }
 0xcc5   :  { %v1658_v24 = vpack.c.bf16 %v1656_v23, %v1656_v23 }
 0xcc7   :  { %2221 = vmatmul.mubr.msk.bf16.vlgmr.msra.gmra.mxu0 %vm306_vm4, %v1658_v24 }
 0xd83   :  { %v1699_v26 = vpop.f32.mrf.mxu1 }
 0xd85   :  { %v2216_v27 = vpop.f32.mrf.mxu1 }
 0xd87   :  { %v1702_v29 = vpop.f32.mrf.mxu1  ;;  %v1745_v31 = vpop.f32.mrf.mxu0 }
 0xd88   :  { %v1751_v32 = vpack.c.bf16 %v1745_v31, %v1699_v26 }
 0xd89   :  { %v2217_v33 = vpop.f32.mrf.mxu1  ;;  %v2222_v34 = vpop.f32.mrf.mxu0 }
 0xd8a   :  { %2227 = vmatmul.mubr.msk.bf16.vlgmr.msra.gmra.mxu1 %vm213_vm2, %v1751_v32 }
 0xd8b   :  { %v1748_v35 = vpop.f32.mrf.mxu0 }
 0xd8d   :  { %v2223_v36 = vpop.f32.mrf.mxu0 }
 0xe4a   :  { %v1798_v1 = vpop.f32.mrf.mxu1 }
 0xe4b   :  { %v1805_v39 = vadd.f32 %v1798_v1, %v2625_v38 }
 0xe4c   :  { %v2228_v40 = vpop.f32.mrf.mxu1 }
 0xe4d   :  { %v1814_v41 = vadd.f32 %v1937_v37, %v1805_v39 }
 0xe4e   :  { %v1801_v5 = vpop.f32.mrf.mxu1 }
 0xe4f   :  { %1816 = vst.msk [vmem:[#allocation2] sm:$0xff] %vm48_vm1, %v1814_v41  ;;  %v1806_v43 = vadd.f32 %v1801_v5, %v2629_v42 }
 0xe50   :  { %v2229_v44 = vpop.f32.mrf.mxu1 }
 0xe51   :  { %v1815_v45 = vadd.f32 %v1937_v37, %v1806_v43 }
 0xe53   :  { %1817 = vst.msk [vmem:[#allocation2 + $0x8] sm:$0xff] %vm48_vm1, %v1815_v45 }
 0xe54   :  { %2307 = shalt.err (!%p2304_p4)
}
 0xe55   :  { %s2321_s5 = smov 128   ;;  %s2322_s30 = smov 8  }
 0xe56   :  { %1829 = dma.vmem_to_hbm [thread:$0]  %s1824_s28, 256, %s2672_s6, [#allocation3], %s2321_s5, %s2321_s5, %s2322_s30  }
 0xe57   :  { %2316 = dma.done.wait [#allocation3], 256  }
 0xe58   :  { %2317 = vsyncadd [#allocation3], 4294967040 }
 0xe59   :  { %1833 = vsyncpa [#allocation3], 1 }

</bundles_post_ra>
